<compile_context>
chip_gen: v7x
topology: tpu7x:2x2x1
jax: 0.10.0
libtpu: 0.0.40
codegen_flags: <defaults>
</compile_context>

<pallas_src>
import functools

import jax
import jax.numpy as jnp
from jax.experimental import pallas as pl
from jax.experimental.pallas import tpu as pltpu


def _round_up(x, m):
    return ((x + m - 1) // m) * m


def _critic_kernel(obs_ref, h_ref,
                   w1_ref, b1_ref,
                   wg_ref, bg_ref,
                   w2_ref, b2_ref,
                   out_ref, *, hidden_dim):
    H = hidden_dim
    obs = obs_ref[...].astype(jnp.float32)
    h_in = h_ref[...].astype(jnp.float32)

    # fc1 + ReLU (MXU dot #1).
    x = jnp.dot(obs, w1_ref[...], preferred_element_type=jnp.float32) + b1_ref[...]
    x = jnp.maximum(x, 0.0)

    # GRUCell (PyTorch semantics) with both gate matmuls fused into one dot:
    #   [gi | gh] = [x | h] @ [[Wih^T, 0], [0, Whh^T]] + [bih | bhh]
    # (zero blocks contribute exactly 0, so gi/gh match the separate dots bit-for-bit)
    #   r = sigmoid(gi_r + gh_r); z = sigmoid(gi_z + gh_z)
    #   n = tanh(gi_n + r * gh_n); h' = (1 - z) * n + z * h
    xh = jnp.concatenate([x, h_in], axis=-1)                        # (tb, 2H)
    g = jnp.dot(xh, wg_ref[...], preferred_element_type=jnp.float32) + bg_ref[...]  # (tb, 6H)
    gi = g[:, :3 * H]
    gh = g[:, 3 * H:]

    r = jax.nn.sigmoid(gi[:, 0:H] + gh[:, 0:H])
    z = jax.nn.sigmoid(gi[:, H:2 * H] + gh[:, H:2 * H])
    n = jnp.tanh(gi[:, 2 * H:3 * H] + r * gh[:, 2 * H:3 * H])
    h_new = (1.0 - z) * n + z * h_in

    # fc2 with the weight zero-padded to Q_PAD output lanes (MXU dot #3), then the
    # new hidden state is appended on the lane axis so the single output block is a
    # lane-dense multiple of 128 -> one unmasked, lane-dense store / DMA stream.
    q = jnp.dot(h_new, w2_ref[...], preferred_element_type=jnp.float32) + b2_ref[...]  # (tb, Q_PAD)
    out_ref[...] = jnp.concatenate([q, h_new], axis=-1).astype(out_ref.dtype)          # (tb, Q_PAD + H)


def prepare_params(params, rnn_hidden_dim):
    """One-time weight packing (hoisted out of the per-call path).

    - fc1 weight transposed to (in, H).
    - GRU gate weights packed block-diagonally into a single (2H, 6H) matrix so the
      two gate matmuls fuse into one MXU dot; biases concatenated to (1, 6H).
    - fc2 weight transposed and zero-padded to Q_PAD = round_up(A + H, 128) - H output
      lanes so [q | h_new] forms a single 128-lane-dense output block.
    """
    H = rnn_hidden_dim
    A = params["fc2_w"].shape[0]
    out_w = _round_up(A + H, 128)
    q_pad_w = out_w - H
    assert q_pad_w >= A

    wg = jnp.zeros((2 * H, 6 * H), jnp.float32)
    wg = wg.at[:H, :3 * H].set(params["rnn_wih"].T)
    wg = wg.at[H:, 3 * H:].set(params["rnn_whh"].T)
    bg = jnp.concatenate([params["rnn_bih"], params["rnn_bhh"]]
                         ).reshape(1, -1).astype(jnp.float32)

    w2_pad = jnp.zeros((H, q_pad_w), jnp.float32).at[:, :A].set(params["fc2_w"].T)
    b2_pad = jnp.zeros((1, q_pad_w), jnp.float32).at[:, :A].set(params["fc2_b"])

    return {
        "w1_t": params["fc1_w"].T.astype(jnp.float32),                 # (in, H)
        "b1": params["fc1_b"].reshape(1, -1).astype(jnp.float32),      # (1, H)
        "wg": wg,                                                      # (2H, 6H)
        "bg": bg,                                                      # (1, 6H)
        "w2_pad": w2_pad,                                              # (H, Q_PAD)
        "b2_pad": b2_pad,                                              # (1, Q_PAD)
        "n_actions": A,
    }


def critic_forward(obs, hidden_state, prepared, rnn_hidden_dim, *, max_tile_b=2048):
    """obs: (B, input_shape); hidden_state: any shape reshapeable to (B, H)."""
    H = rnn_hidden_dim
    h_in = hidden_state.reshape(-1, H)
    B, in_dim = obs.shape
    assert h_in.shape[0] == B, (
        f"hidden_state batch ({h_in.shape[0]}) must match obs batch ({B})")

    A = prepared["n_actions"]
    q_pad_w = prepared["w2_pad"].shape[1]
    out_w = q_pad_w + H            # multiple of 128 -> lane-dense single output block

    # Batch tiling: pad B to a multiple of 8 and of the tile (no ragged/OOB tiles),
    # and keep >= 2 grid steps whenever possible so v7x megacore can shard the batch.
    B8 = _round_up(max(B, 1), 8)
    if B8 <= 8:
        tb = B8
    else:
        tb = min(max_tile_b, _round_up(pl.cdiv(B8, 2), 8))
    B_full = _round_up(B8, tb)
    grid = (B_full // tb,)

    if B_full != B:
        pad = B_full - B
        obs = jnp.pad(obs, ((0, pad), (0, 0)))
        h_in = jnp.pad(h_in, ((0, pad), (0, 0)))

    def batch_spec(feat):
        return pl.BlockSpec((tb, feat), lambda i: (i, 0))

    def resident_spec(arr):  # weights/biases: same block every step -> fetched once
        return pl.BlockSpec(arr.shape, lambda i: (0, 0))

    # Activations pass through in their original dtype; the kernel upcasts in VMEM.
    args = (obs, h_in,
            prepared["w1_t"], prepared["b1"],
            prepared["wg"], prepared["bg"],
            prepared["w2_pad"], prepared["b2_pad"])

    in_specs = [batch_spec(in_dim), batch_spec(H)] + [resident_spec(a) for a in args[2:]]

    out = pl.pallas_call(
        functools.partial(_critic_kernel, hidden_dim=H),
        grid=grid,
        out_shape=jax.ShapeDtypeStruct((B_full, out_w), jnp.float32),
        in_specs=in_specs,
        out_specs=batch_spec(out_w),
        compiler_params=pltpu.CompilerParams(
            dimension_semantics=("parallel",)),
    )(*args)

    q = out[:B, :A]
    h_new = out[:B, q_pad_w:]
    return q, h_new


def critic_reference(obs, hidden_state, params, rnn_hidden_dim):
    """Pure-JAX reference of the PyTorch forward, for a sanity check."""
    H = rnn_hidden_dim
    h = hidden_state.reshape(-1, H)
    x = jax.nn.relu(obs @ params["fc1_w"].T + params["fc1_b"])
    gi = x @ params["rnn_wih"].T + params["rnn_bih"]
    gh = h @ params["rnn_whh"].T + params["rnn_bhh"]
    r = jax.nn.sigmoid(gi[:, :H] + gh[:, :H])
    z = jax.nn.sigmoid(gi[:, H:2 * H] + gh[:, H:2 * H])
    n = jnp.tanh(gi[:, 2 * H:] + r * gh[:, 2 * H:])
    h_new = (1.0 - z) * n + z * h
    q = h_new @ params["fc2_w"].T + params["fc2_b"]
    return q, h_new


def init_params(key, input_shape, rnn_hidden_dim, n_actions):
    ks = jax.random.split(key, 8)
    H = rnn_hidden_dim

    def uni(k, shape, fan_in):
        bound = 1.0 / jnp.sqrt(fan_in)
        return jax.random.uniform(k, shape, jnp.float32, -bound, bound)

    return {
        "fc1_w": uni(ks[0], (H, input_shape), input_shape),
        "fc1_b": uni(ks[1], (H,), input_shape),
        "rnn_wih": uni(ks[2], (3 * H, H), H),
        "rnn_whh": uni(ks[3], (3 * H, H), H),
        "rnn_bih": uni(ks[4], (3 * H,), H),
        "rnn_bhh": uni(ks[5], (3 * H,), H),
        "fc2_w": uni(ks[6], (n_actions, H), H),
        "fc2_b": uni(ks[7], (n_actions,), H),
    }


if __name__ == "__main__":
    batch = 2
    input_shape = 16       # obs feature dim
    rnn_hidden_dim = 32
    n_actions = 8

    key = jax.random.PRNGKey(0)
    k_obs, k_h, k_p, k_obs2, k_h2, k_obs3, k_h3 = jax.random.split(key, 7)

    params = init_params(k_p, input_shape, rnn_hidden_dim, n_actions)
    prepared = prepare_params(params, rnn_hidden_dim)   # one-time packing

    # Small-batch check (shapes implied by the module); batch is padded to 8 inside.
    obs = jax.random.normal(k_obs, (batch, input_shape), jnp.float32)
    hidden_state = jax.random.normal(k_h, (batch, rnn_hidden_dim), jnp.float32)

    q, h = critic_forward(obs, hidden_state, prepared, rnn_hidden_dim)
    jax.block_until_ready((q, h))

    q_ref, h_ref = critic_reference(obs, hidden_state, params, rnn_hidden_dim)
    assert q.shape == (batch, n_actions) and h.shape == (batch, rnn_hidden_dim)
    assert jnp.allclose(q, q_ref, atol=1e-5, rtol=1e-5)
    assert jnp.allclose(h, h_ref, atol=1e-5, rtol=1e-5)

    # Larger batch: exercises the tiled, pipelined, megacore-parallel grid path.
    big = 4096
    obs_b = jax.random.normal(k_obs2, (big, input_shape), jnp.float32)
    h_b = jax.random.normal(k_h2, (big, rnn_hidden_dim), jnp.float32)
    q_b, hn_b = critic_forward(obs_b, h_b, prepared, rnn_hidden_dim)
    jax.block_until_ready((q_b, hn_b))
    q_br, h_br = critic_reference(obs_b, h_b, params, rnn_hidden_dim)
    assert q_b.shape == (big, n_actions) and hn_b.shape == (big, rnn_hidden_dim)
    assert jnp.allclose(q_b, q_br, atol=1e-4, rtol=1e-4)
    assert jnp.allclose(hn_b, h_br, atol=1e-4, rtol=1e-4)

    # Non-multiple-of-8 batch: exercises the explicit zero-padding / slicing path.
    odd = 1003
    obs_o = jax.random.normal(k_obs3, (odd, input_shape), jnp.float32)
    h_o = jax.random.normal(k_h3, (odd, rnn_hidden_dim), jnp.float32)
    q_o, hn_o = critic_forward(obs_o, h_o, prepared, rnn_hidden_dim)
    jax.block_until_ready((q_o, hn_o))
    q_or, h_or = critic_reference(obs_o, h_o, params, rnn_hidden_dim)
    assert q_o.shape == (odd, n_actions) and hn_o.shape == (odd, rnn_hidden_dim)
    assert jnp.allclose(q_o, q_or, atol=1e-4, rtol=1e-4)
    assert jnp.allclose(hn_o, h_or, atol=1e-4, rtol=1e-4)

    print("KERNEL_OK")
</pallas_src>

<mosaic_0001>
module attributes {stable_mosaic.version = 11 : i64} {
  func.func @_critic_kernel(%arg0: i32, %arg1: memref<8x16xf32, #tpu.memory_space<vmem>>, %arg2: memref<8x32xf32, #tpu.memory_space<vmem>>, %arg3: memref<16x32xf32, #tpu.memory_space<vmem>>, %arg4: memref<1x32xf32, #tpu.memory_space<vmem>>, %arg5: memref<64x192xf32, #tpu.memory_space<vmem>>, %arg6: memref<1x192xf32, #tpu.memory_space<vmem>>, %arg7: memref<32x96xf32, #tpu.memory_space<vmem>>, %arg8: memref<1x96xf32, #tpu.memory_space<vmem>>, %arg9: memref<8x128xf32, #tpu.memory_space<vmem>>) attributes {dimension_semantics = [#tpu.dimension_semantics<parallel>], iteration_bounds = array<i64: 1>, scalar_prefetch = 0 : i64, scratch_operands = 0 : i64, tpu.core_type = #tpu.core_type<tc>, window_params = [{transform_indices = @transform_0, window_bounds = array<i64: 8, 16>}, {transform_indices = @transform_1, window_bounds = array<i64: 8, 32>}, {pipeline_mode = #tpu.pipeline_mode<synchronous>, transform_indices = @transform_2, window_bounds = array<i64: 16, 32>}, {pipeline_mode = #tpu.pipeline_mode<synchronous>, transform_indices = @transform_3, window_bounds = array<i64: 1, 32>}, {pipeline_mode = #tpu.pipeline_mode<synchronous>, transform_indices = @transform_4, window_bounds = array<i64: 64, 192>}, {pipeline_mode = #tpu.pipeline_mode<synchronous>, transform_indices = @transform_5, window_bounds = array<i64: 1, 192>}, {pipeline_mode = #tpu.pipeline_mode<synchronous>, transform_indices = @transform_6, window_bounds = array<i64: 32, 96>}, {pipeline_mode = #tpu.pipeline_mode<synchronous>, transform_indices = @transform_7, window_bounds = array<i64: 1, 96>}, {transform_indices = @transform_8, window_bounds = array<i64: 8, 128>}]} {
    %c0 = arith.constant 0 : index
    %c0_0 = arith.constant 0 : index
    %0 = vector.load %arg1[%c0, %c0_0] : memref<8x16xf32, #tpu.memory_space<vmem>>, vector<8x16xf32>
    %c0_1 = arith.constant 0 : index
    %c0_2 = arith.constant 0 : index
    %1 = vector.load %arg2[%c0_1, %c0_2] : memref<8x32xf32, #tpu.memory_space<vmem>>, vector<8x32xf32>
    %c0_3 = arith.constant 0 : index
    %c0_4 = arith.constant 0 : index
    %2 = vector.load %arg3[%c0_3, %c0_4] : memref<16x32xf32, #tpu.memory_space<vmem>>, vector<16x32xf32>
    %cst = arith.constant dense<0.000000e+00> : vector<8x32xf32>
    %3 = tpu.matmul %0, %2, %cst {dimension_numbers = #tpu.dot_dimension_numbers<[1], [0], [0], [1], [0, 0, 1, 1], [], []>} : vector<8x16xf32>, vector<16x32xf32>, vector<8x32xf32> -> vector<8x32xf32>
    %c0_5 = arith.constant 0 : index
    %c0_6 = arith.constant 0 : index
    %4 = vector.load %arg4[%c0_5, %c0_6] : memref<1x32xf32, #tpu.memory_space<vmem>>, vector<1x32xf32>
    %5 = vector.broadcast %4 : vector<1x32xf32> to vector<8x32xf32>
    %6 = arith.addf %3, %5 : vector<8x32xf32>
    %cst_7 = arith.constant 0.000000e+00 : f32
    %7 = vector.broadcast %cst_7 : f32 to vector<8x32xf32>
    %8 = arith.maximumf %6, %7 : vector<8x32xf32>
    %9 = tpu.concatenate %8, %1 in 1 : vector<8x32xf32>, vector<8x32xf32> -> vector<8x64xf32>
    %c0_8 = arith.constant 0 : index
    %c0_9 = arith.constant 0 : index
    %10 = vector.load %arg5[%c0_8, %c0_9] : memref<64x192xf32, #tpu.memory_space<vmem>>, vector<64x192xf32>
    %cst_10 = arith.constant dense<0.000000e+00> : vector<8x192xf32>
    %11 = tpu.matmul %9, %10, %cst_10 {dimension_numbers = #tpu.dot_dimension_numbers<[1], [0], [0], [1], [0, 0, 1, 1], [], []>} : vector<8x64xf32>, vector<64x192xf32>, vector<8x192xf32> -> vector<8x192xf32>
    %c0_11 = arith.constant 0 : index
    %c0_12 = arith.constant 0 : index
    %12 = vector.load %arg6[%c0_11, %c0_12] : memref<1x192xf32, #tpu.memory_space<vmem>>, vector<1x192xf32>
    %13 = vector.broadcast %12 : vector<1x192xf32> to vector<8x192xf32>
    %14 = arith.addf %11, %13 : vector<8x192xf32>
    %15 = vector.extract_strided_slice %14 {offsets = [0, 0], sizes = [8, 96], strides = [1, 1]} : vector<8x192xf32> to vector<8x96xf32>
    %16 = vector.extract_strided_slice %14 {offsets = [0, 96], sizes = [8, 96], strides = [1, 1]} : vector<8x192xf32> to vector<8x96xf32>
    %17 = vector.extract_strided_slice %15 {offsets = [0, 0], sizes = [8, 32], strides = [1, 1]} : vector<8x96xf32> to vector<8x32xf32>
    %18 = vector.extract_strided_slice %16 {offsets = [0, 0], sizes = [8, 32], strides = [1, 1]} : vector<8x96xf32> to vector<8x32xf32>
    %19 = arith.addf %17, %18 : vector<8x32xf32>
    %20 = arith.negf %19 : vector<8x32xf32>
    %21 = math.exp %20 : vector<8x32xf32>
    %cst_13 = arith.constant 1.000000e+00 : f32
    %22 = vector.broadcast %cst_13 : f32 to vector<8x32xf32>
    %23 = arith.addf %22, %21 : vector<8x32xf32>
    %24 = arith.divf %22, %23 : vector<8x32xf32>
    %25 = vector.extract_strided_slice %15 {offsets = [0, 32], sizes = [8, 32], strides = [1, 1]} : vector<8x96xf32> to vector<8x32xf32>
    %26 = vector.extract_strided_slice %16 {offsets = [0, 32], sizes = [8, 32], strides = [1, 1]} : vector<8x96xf32> to vector<8x32xf32>
    %27 = arith.addf %25, %26 : vector<8x32xf32>
    %28 = arith.negf %27 : vector<8x32xf32>
    %29 = math.exp %28 : vector<8x32xf32>
    %cst_14 = arith.constant 1.000000e+00 : f32
    %30 = vector.broadcast %cst_14 : f32 to vector<8x32xf32>
    %31 = arith.addf %30, %29 : vector<8x32xf32>
    %32 = arith.divf %30, %31 : vector<8x32xf32>
    %33 = vector.extract_strided_slice %15 {offsets = [0, 64], sizes = [8, 32], strides = [1, 1]} : vector<8x96xf32> to vector<8x32xf32>
    %34 = vector.extract_strided_slice %16 {offsets = [0, 64], sizes = [8, 32], strides = [1, 1]} : vector<8x96xf32> to vector<8x32xf32>
    %35 = arith.mulf %24, %34 : vector<8x32xf32>
    %36 = arith.addf %33, %35 : vector<8x32xf32>
    %37 = math.tanh %36 : vector<8x32xf32>
    %cst_15 = arith.constant 1.000000e+00 : f32
    %38 = vector.broadcast %cst_15 : f32 to vector<8x32xf32>
    %39 = arith.subf %38, %32 : vector<8x32xf32>
    %40 = arith.mulf %39, %37 : vector<8x32xf32>
    %41 = arith.mulf %32, %1 : vector<8x32xf32>
    %42 = arith.addf %40, %41 : vector<8x32xf32>
    %c0_16 = arith.constant 0 : index
    %c0_17 = arith.constant 0 : index
    %43 = vector.load %arg7[%c0_16, %c0_17] : memref<32x96xf32, #tpu.memory_space<vmem>>, vector<32x96xf32>
    %cst_18 = arith.constant dense<0.000000e+00> : vector<8x96xf32>
    %44 = tpu.matmul %42, %43, %cst_18 {dimension_numbers = #tpu.dot_dimension_numbers<[1], [0], [0], [1], [0, 0, 1, 1], [], []>} : vector<8x32xf32>, vector<32x96xf32>, vector<8x96xf32> -> vector<8x96xf32>
    %c0_19 = arith.constant 0 : index
    %c0_20 = arith.constant 0 : index
    %45 = vector.load %arg8[%c0_19, %c0_20] : memref<1x96xf32, #tpu.memory_space<vmem>>, vector<1x96xf32>
    %46 = vector.broadcast %45 : vector<1x96xf32> to vector<8x96xf32>
    %47 = arith.addf %44, %46 : vector<8x96xf32>
    %48 = tpu.concatenate %47, %42 in 1 : vector<8x96xf32>, vector<8x32xf32> -> vector<8x128xf32>
    %c0_21 = arith.constant 0 : index
    %c0_22 = arith.constant 0 : index
    %49 = vector.load %arg9[%c0_21, %c0_22] : memref<8x128xf32, #tpu.memory_space<vmem>>, vector<8x128xf32>
    tpu.vector_store %arg9[%c0_21, %c0_22], %48 {strides = array<i32>} : memref<8x128xf32, #tpu.memory_space<vmem>>, vector<8x128xf32>,
    return
  }
  func.func @transform_0(%arg0: i32) -> (i32, i32) {
    %c0_i32 = arith.constant 0 : i32
    %c0_i32_0 = arith.constant 0 : i32
    return %arg0, %c0_i32 : i32, i32
  }
  func.func @transform_1(%arg0: i32) -> (i32, i32) {
    %c0_i32 = arith.constant 0 : i32
    %c0_i32_0 = arith.constant 0 : i32
    return %arg0, %c0_i32 : i32, i32
  }
  func.func @transform_2(%arg0: i32) -> (i32, i32) {
    %c0_i32 = arith.constant 0 : i32
    %c0_i32_0 = arith.constant 0 : i32
    %c0_i32_1 = arith.constant 0 : i32
    return %c0_i32, %c0_i32_0 : i32, i32
  }
  func.func @transform_3(%arg0: i32) -> (i32, i32) {
    %c0_i32 = arith.constant 0 : i32
    %c0_i32_0 = arith.constant 0 : i32
    %c0_i32_1 = arith.constant 0 : i32
    return %c0_i32, %c0_i32_0 : i32, i32
  }
  func.func @transform_4(%arg0: i32) -> (i32, i32) {
    %c0_i32 = arith.constant 0 : i32
    %c0_i32_0 = arith.constant 0 : i32
    %c0_i32_1 = arith.constant 0 : i32
    return %c0_i32, %c0_i32_0 : i32, i32
  }
  func.func @transform_5(%arg0: i32) -> (i32, i32) {
    %c0_i32 = arith.constant 0 : i32
    %c0_i32_0 = arith.constant 0 : i32
    %c0_i32_1 = arith.constant 0 : i32
    return %c0_i32, %c0_i32_0 : i32, i32
  }
  func.func @transform_6(%arg0: i32) -> (i32, i32) {
    %c0_i32 = arith.constant 0 : i32
    %c0_i32_0 = arith.constant 0 : i32
    %c0_i32_1 = arith.constant 0 : i32
    return %c0_i32, %c0_i32_0 : i32, i32
  }
  func.func @transform_7(%arg0: i32) -> (i32, i32) {
    %c0_i32 = arith.constant 0 : i32
    %c0_i32_0 = arith.constant 0 : i32
    %c0_i32_1 = arith.constant 0 : i32
    return %c0_i32, %c0_i32_0 : i32, i32
  }
  func.func @transform_8(%arg0: i32) -> (i32, i32) {
    %c0_i32 = arith.constant 0 : i32
    %c0_i32_0 = arith.constant 0 : i32
    return %arg0, %c0_i32 : i32, i32
  }
}

</mosaic_0001>

<bundles_post_ra>
// kernel: tpu_custom_call.1
= control target key start
LH: loop header
LB: loop body
LE: loop exit
PB: predicated region body
PF: predicated region fallthrough
CT: control target
= control target key end

     0   :  { %13 = vsyncpa [#allocation3], 0  ;;  %s831_s0 = inlined_call_operand.hbm [shape: f32[8,16], index: 0, kind: input, shape index: {}]   ;;  %s832_s1 = inlined_call_operand.hbm [shape: f32[8,32], index: 1, kind: input, shape index: {}]   ;;  %s833_s2 = inlined_call_operand.hbm [shape: f32[16,32], index: 2, kind: input, shape index: {}]   ;;  %s834_s3 = inlined_call_operand.vmem [shape: f32[1,32], index: 3, kind: input, shape index: {}]   ;;  %s835_s4 = inlined_call_operand.hbm [shape: f32[64,192], index: 4, kind: input, shape index: {}]   ;;  %s836_s5 = inlined_call_operand.vmem [shape: f32[1,192], index: 5, kind: input, shape index: {}]   ;;  %s837_s6 = inlined_call_operand.hbm [shape: f32[32,96], index: 6, kind: input, shape index: {}]   ;;  %s838_s7 = inlined_call_operand.vmem [shape: f32[1,96], index: 7, kind: input, shape index: {}]   ;;  %s839_s8 = inlined_call_operand.hbm [shape: f32[8,128], index: 8, kind: output, shape index: {}]  }
   0x1   :  { %14 = vsyncpa [#allocation6], 0 }
   0x2   :  { %15 = vsyncpa [#allocation9], 0 }
   0x3   :  { %16 = vsyncpa [#allocation4], 0  ;;  %s662_s27 = smov [#allocation5]   ;;  %s663_s29 = smov [#allocation8]  }
   0x4   :  { %s33_s28 = sshll.u32 %s662_s27, 4  ;;  %s56_s30 = sshll.u32 %s663_s29, 4  ;;  %s34_s28 = int_to_ptr.vmem [resolvable:$true] %s33_s28  ;;  %s723_s30 = int_to_ptr.vmem [resolvable:$true] %s56_s30 }
   0x5   :  { %s522_s11 = scalar_lea.hbm %s832_s1, 128 }
   0x6   :  { %p523_p0 = scmp.ne.s32.totalorder %s832_s1, %s522_s11  ;;  %p526_p1 = scmp.lt.u32.totalorder %s522_s11, %s832_s1 }
   0x8   :  { %p528_p2 = pnand %p526_p1, %p523_p0 }
   0xa   :  { %531 = shalt.err (!%p528_p2)
}
   0xb   :  { %s532_s16 = scalar_lea.vmem %s34_s28, 128  ;;  %p537_p4 = scmp.lt.s32.totalorder %s34_s28, %s34_s28 }
   0xc   :  { %p533_p3 = scmp.ne.s32.totalorder %s34_s28, %s532_s16  ;;  %p538_p5 = scmp.lt.s32.totalorder %s532_s16, %s532_s16 }
   0xe   :  { %p539_p6 = por %p538_p5, %p537_p4 }
  0x10   :  { %p540_p7 = pnand %p539_p6, %p533_p3 }
  0x12   :  { %543 = shalt.err (!%p540_p7)
}
  0x13   :  { %36 = dma.hbm_to_vmem [thread:$0]  %s832_s1, 128, %s34_s28, [#allocation6]  }
  0x14   :  { %s544_s21 = scalar_lea.hbm %s835_s4, 2048 }
  0x15   :  { %p545_p8 = scmp.ne.s32.totalorder %s835_s4, %s544_s21  ;;  %p548_p9 = scmp.lt.u32.totalorder %s544_s21, %s835_s4 }
  0x17   :  { %p550_p10 = pnand %p548_p9, %p545_p8 }
  0x19   :  { %553 = shalt.err (!%p550_p10)
}
  0x1a   :  { %s554_s26 = scalar_lea.vmem %s723_s30, 2048  ;;  %p559_p12 = scmp.lt.s32.totalorder %s723_s30, %s723_s30 }
  0x1b   :  { %p555_p11 = scmp.ne.s32.totalorder %s723_s30, %s554_s26  ;;  %p560_p13 = scmp.lt.s32.totalorder %s554_s26, %s554_s26 }
  0x1d   :  { %p561_p0 = por %p560_p13, %p559_p12 }
  0x1f   :  { %p562_p1 = pnand %p561_p0, %p555_p11 }
  0x21   :  { %565 = shalt.err (!%p562_p1)
}
  0x22   :  { %s664_s1 = smov 256   ;;  %s665_s27 = smov 16  }
  0x23   :  { %62 = dma.hbm_to_vmem [thread:$0]  %s835_s4, 2048, %s723_s30, [#allocation9], %s664_s1, %s664_s1, %s665_s27  }
  0x24   :  { %s666_s9 = smov [#allocation2]   ;;  %s667_s11 = smov [#allocation7]  }
  0x25   :  { %s23_s10 = sshll.u32 %s666_s9, 4  ;;  %s42_s12 = sshll.u32 %s667_s11, 4  ;;  %s24_s10 = int_to_ptr.vmem [resolvable:$true] %s23_s10  ;;  %s754_s12 = int_to_ptr.vmem [resolvable:$true] %s42_s12 }
  0x26   :  { %s566_s15 = scalar_lea.hbm %s831_s0, 128 }
  0x27   :  { %p567_p2 = scmp.ne.s32.totalorder %s831_s0, %s566_s15  ;;  %p570_p3 = scmp.lt.u32.totalorder %s566_s15, %s831_s0 }
  0x29   :  { %p572_p4 = pnand %p570_p3, %p567_p2 }
  0x2b   :  { %575 = shalt.err (!%p572_p4)
}
  0x2c   :  { %s576_s4 = scalar_lea.vmem %s24_s10, 128  ;;  %p581_p6 = scmp.lt.s32.totalorder %s24_s10, %s24_s10 }
  0x2d   :  { %p577_p5 = scmp.ne.s32.totalorder %s24_s10, %s576_s4  ;;  %p582_p7 = scmp.lt.s32.totalorder %s576_s4, %s576_s4 }
  0x2f   :  { %p583_p8 = por %p582_p7, %p581_p6 }
  0x31   :  { %p584_p9 = pnand %p583_p8, %p577_p5 }
  0x33   :  { %587 = shalt.err (!%p584_p9)
}
  0x34   :  { %26 = dma.hbm_to_vmem [thread:$0]  %s831_s0, 128, %s24_s10, [#allocation3]  }
  0x35   :  { %s588_s23 = scalar_lea.hbm %s833_s2, 256 }
  0x36   :  { %p589_p10 = scmp.ne.s32.totalorder %s833_s2, %s588_s23  ;;  %p592_p11 = scmp.lt.u32.totalorder %s588_s23, %s833_s2 }
  0x38   :  { %p594_p12 = pnand %p592_p11, %p589_p10 }
  0x3a   :  { %597 = shalt.err (!%p594_p12)
}
  0x3b   :  { %s598_s27 = scalar_lea.vmem %s754_s12, 256  ;;  %p603_p0 = scmp.lt.s32.totalorder %s754_s12, %s754_s12 }
  0x3c   :  { %p599_p13 = scmp.ne.s32.totalorder %s754_s12, %s598_s27  ;;  %p604_p1 = scmp.lt.s32.totalorder %s598_s27, %s598_s27 }
  0x3e   :  { %p605_p2 = por %p604_p1, %p603_p0 }
  0x40   :  { %p606_p3 = pnand %p605_p2, %p599_p13 }
  0x42   :  { %609 = shalt.err (!%p606_p3)
}
  0x43   :  { %s668_s0 = smov 128   ;;  %s669_s28 = smov 8  }
  0x44   :  { %48 = dma.hbm_to_vmem [thread:$0]  %s833_s2, 256, %s754_s12, [#allocation6], %s668_s0, %s668_s0, %s669_s28  }
  0x45   :  { %s670_s10 = smov [#allocation10]   ;;  %s610_s15 = scalar_lea.hbm %s837_s6, 512 }
  0x46   :  { %s70_s11 = sshll.u32 %s670_s10, 4  ;;  %p611_p4 = scmp.ne.s32.totalorder %s837_s6, %s610_s15  ;;  %s71_s11 = int_to_ptr.vmem [resolvable:$true] %s70_s11 }
  0x47   :  { %p614_p5 = scmp.lt.u32.totalorder %s610_s15, %s837_s6 }
  0x49   :  { %p616_p6 = pnand %p614_p5, %p611_p4 }
  0x4b   :  { %619 = shalt.err (!%p616_p6)
}
  0x4c   :  { %s620_s4 = scalar_lea.vmem %s71_s11, 512  ;;  %p625_p8 = scmp.lt.s32.totalorder %s71_s11, %s71_s11 }
  0x4d   :  { %p621_p7 = scmp.ne.s32.totalorder %s71_s11, %s620_s4  ;;  %p626_p9 = scmp.lt.s32.totalorder %s620_s4, %s620_s4 }
  0x4f   :  { %p627_p10 = por %p626_p9, %p625_p8 }
  0x51   :  { %p628_p11 = pnand %p627_p10, %p621_p7 }
  0x53   :  { %631 = shalt.err (!%p628_p11)
}
  0x54   :  { %76 = dma.hbm_to_vmem [thread:$0]  %s837_s6, 512, %s71_s11, [#allocation9], %s668_s0, %s668_s0, %s669_s28  }
  0x55   :  { %654 = dma.done.wait [#allocation3], 128  }
  0x56   :  { %655 = vsyncadd [#allocation3], 4294967168 }
  0x57   :  { %656 = dma.done.wait [#allocation6], 384  }
  0x58   :  { %657 = vsyncadd [#allocation6], 4294966912 }
  0x59   :  { %658 = dma.done.wait [#allocation9], 2560  }
  0x5a   :  { %659 = vsyncadd [#allocation9], 4294964736  ;;  %v671_v0 = vmov 0.0|0.0   ;;  %vm672_vm0 = vmmov 0   ;;  %v673_v1 = vmov 0.0   ;;  %v96_v2 = vld [vmem:[#allocation7] sm:$0xff]  ;;  %v204_v38 = vlaneseq }
  0x5b   :  { %471 = vmatprep.subr.bf16.mxu0 %v671_v0  ;;  %457 = vmatprep.mubr.msk.f32.mxu0 %vm672_vm0, %v673_v1  ;;  %v97_v3 = vld [vmem:[#allocation7 + $0x8] sm:$0xff]  ;;  %v94_v5 = vld [vmem:[#allocation2] sm:$0xff]  ;;  %v95_v6 = vld [vmem:[#allocation5] sm:$0xff]  ;;  %s674_s6 = smov 32   ;;  %vm105_vm1 = vcmask 130048   ;;  %vm184_vm2 = vcmask 261120  }
  0x5c   :  { %282 = vmatprep.mubr.f32.mxu1 %v673_v1  ;;  %v472_v4 = vpack.c.bf16 %v97_v3, %v96_v2  ;;  %v187_v7 = vld [vmem:[#allocation8 + $0x8] sm:$0xff]  ;;  %v189_v8 = vld [vmem:[#allocation8 + $0x18] sm:$0xff]  ;;  %181 = vrot.lane.b32.xlu0 %v95_v6, %s674_s6  ;;  %v186_v10 = vld [vmem:[#allocation8] sm:$0xff]  ;;  %vm214_vm3 = vcmask 523264   ;;  %v205_v39 = vshrl.u32 %v204_v38, 7  ;;  %s677_s25 = smov [#allocation11]  }
  0x5d   :  { %v474_v9 = vpack.c.bf16 %v189_v8, %v187_v7  ;;  %v188_v11 = vld [vmem:[#allocation8 + $0x10] sm:$0xff]  ;;  %v191_v12 = vld [vmem:[#allocation8 + $0x28] sm:$0xff]  ;;  %v193_v14 = vld [vmem:[#allocation8 + $0x38] sm:$0xff]  ;;  %s427_s26 = sshll.u32 %s677_s25, 4  ;;  %vm418_vm4 = vcmask 785408   ;;  %s428_s26 = int_to_ptr.vmem [resolvable:$true] %s427_s26 }
  0x5e   :  { %473 = vmatpush3.bf16.msra.mxu0 %v472_v4  ;;  %v476_v13 = vpack.c.bf16 %v188_v11, %v186_v10  ;;  %v190_v15 = vld [vmem:[#allocation8 + $0x20] sm:$0xff]  ;;  %v192_v16 = vld [vmem:[#allocation8 + $0x30] sm:$0xff]  ;;  %v478_v17 = vpack.c.bf16 %v193_v14, %v191_v12  ;;  %v195_v18 = vld [vmem:[#allocation8 + $0x48] sm:$0xff]  ;;  %v206_v40 = vsub.s32 0, %v205_v39  ;;  %v210_v42 = vsub.s32 1, %v205_v39  ;;  %s632_s1 = scalar_lea.vmem %s428_s26, 128  ;;  %p637_p13 = scmp.lt.s32.totalorder %s428_s26, %s428_s26 }
  0x5f   :  { %475 = vmatprep.subr.bf16.mxu1 %v474_v9  ;;  %v197_v19 = vld [vmem:[#allocation8 + $0x58] sm:$0xff]  ;;  %490 = vmatprep.subr.bf16.mxu0 %v671_v0  ;;  %v480_v20 = vpack.c.bf16 %v192_v16, %v190_v15  ;;  %v194_v22 = vld [vmem:[#allocation8 + $0x40] sm:$0xff]  ;;  %v196_v23 = vld [vmem:[#allocation8 + $0x50] sm:$0xff]  ;;  %p633_p12 = scmp.ne.s32.totalorder %s428_s26, %s632_s1  ;;  %p638_p0 = scmp.lt.s32.totalorder %s632_s1, %s632_s1 }
  0x60   :  { %477 = vmatpush1.bf16.msra.mxu1 %v476_v13  ;;  %v482_v21 = vpack.c.bf16 %v197_v19, %v195_v18  ;;  %v484_v24 = vpack.c.bf16 %v196_v23, %v194_v22  ;;  %v199_v25 = vld [vmem:[#allocation8 + $0x68] sm:$0xff]  ;;  %v201_v26 = vld [vmem:[#allocation8 + $0x78] sm:$0xff]  ;;  %v198_v28 = vld [vmem:[#allocation8 + $0x60] sm:$0xff] }
  0x61   :  { %458 = vmatmul.mubr.msk.f32.vlgmr.msra.gmra.mrb[0].mxu0 %vm105_vm1, %v94_v5  ;;  %479 = vmatprep.subr.bf16.mxu1 %v478_v17  ;;  %v486_v27 = vpack.c.bf16 %v201_v26, %v199_v25  ;;  %v200_v29 = vld [vmem:[#allocation8 + $0x70] sm:$0xff]  ;;  %v438_v31 = vld [vmem:[%s834_s3] ss:$0 sm:$0xff]  ;;  %s675_s3 = smov 96   ;;  %v330_v60 = vld [vmem:[#allocation10 + $0x8] sm:$0xff]  ;;  %p639_p1 = por %p638_p0, %p637_p13 }
  0x62   :  { %468 = vmatprep.mubr.msk.f32.mxu0 %vm672_vm0, %v673_v1  ;;  %v488_v30 = vpack.c.bf16 %v200_v29, %v198_v28  ;;  %v202_v41 = vld [vmem:[%s836_s5] sm:$0x3]  ;;  %s676_s5 = smov 64   ;;  %v331_v61 = vld [vmem:[#allocation10 + $0x10] sm:$0xff]  ;;  %v332_v63 = vld [vmem:[#allocation10 + $0x18] sm:$0xff] }
  0x63   :  { %v207_v43 = vrot.slane %v202_v41, %v206_v40  ;;  %v211_v44 = vrot.slane %v202_v41, %v210_v42  ;;  %v329_v59 = vld [vmem:[#allocation10] sm:$0xff]  ;;  %v494_v1 = vpack.c.bf16 %v332_v63, %v331_v61  ;;  %p640_p2 = pnand %p639_p1, %p633_p12 }
  0x64   :  { %481 = vmatpush1.bf16.msra.mxu1 %v480_v20  ;;  %v491_v62 = vpack.c.bf16 %v330_v60, %v329_v59  ;;  %v443_v14 = vld [vmem:[%s838_s7] ss:$0 sm:$0xff] }
  0x65   :  { %483 = vmatprep.subr.bf16.mxu1 %v482_v21 }
  0x66   :  { %492 = vmatpush3.bf16.msra.mxu0 %v491_v62 }
  0x67   :  { %493 = vmatprep.subr.bf16.mxu0 %v671_v0 }
  0x68   :  { %485 = vmatpush1.bf16.msra.mxu1 %v484_v24 }
  0x69   :  { %487 = vmatprep.subr.bf16.mxu1 %v486_v27 }
  0x6a   :  { %495 = vmatpush3.bf16.msra.mxu0 %v494_v1 }
  0x6c   :  { %489 = vmatpush1.bf16.msra.mxu1 %v488_v30 }
  0xce   :  { %v182_v35 = vpop.permute.xlu0 %181 }
 0x134   :  { %v175_v32 = vpop.f32.mrb[0].mxu0 }
 0x135   :  { %v176_v33 = vadd.f32 %v438_v31, %v175_v32  ;;  %v459_v34 = vpop.f32.mrb[1].mxu0 }
 0x137   :  { %v179_v36 = vmax.f32 %v176_v33, 0.0 }
 0x139   :  { %v185_v37 = vsel %vm184_vm2, %v179_v36, %v182_v35 }
 0x13a   :  { %440 = vmatmul.mubr.msk.f32.vlgmr.msra.gmra.mrb[0].mxu1 %vm214_vm3, %v185_v37 }
 0x20d   :  { %v284_v45 = vpop.f32.mrb[0].mxu1 }
 0x20e   :  { %v285_v46 = vadd.f32 %v284_v45, %v207_v43  ;;  %v286_v47 = vpop.f32.mrb[1].mxu1 }
 0x20f   :  { %v287_v48 = vadd.f32 %v286_v47, %v211_v44 }
 0x210   :  { %290 = vrot.lane.b32.xlu0 %v285_v46, %s674_s6 }
 0x211   :  { %311 = vrot.lane.b32.xlu1 %v287_v48, %s675_s3 }
 0x214   :  { %301 = vrot.lane.b32.xlu0 %v287_v48, %s674_s6 }
 0x282   :  { %v291_v49 = vpop.permute.xlu0 %290 }
 0x283   :  { %v293_v50 = vadd.f32 %v291_v49, %v285_v46  ;;  %v312_v55 = vpop.permute.xlu1 %311 }
 0x285   :  { %v441_v51 = vmul.f32 -1.442695, %v293_v50 }
 0x286   :  { %v302_v3 = vpop.permute.xlu0 %301 }
 0x287   :  { %512 = vpow2.f32 %v441_v51  ;;  %v304_v4 = vadd.f32 %v302_v3, %v285_v46 }
 0x289   :  { %v442_v5 = vmul.f32 -1.442695, %v304_v4 }
 0x291   :  { %v513_v52 = vpop.eup %512 }
 0x292   :  { %v297_v53 = vadd.f32 1.0, %v513_v52 }
 0x294   :  { %514 = vrcp.f32 %v297_v53 }
 0x29e   :  { %v515_v54 = vpop.eup %514 }
 0x29f   :  { %v314_v56 = vmul.f32 %v515_v54, %v312_v55 }
 0x2a1   :  { %316 = vrot.lane.b32.xlu1 %v314_v56, %s676_s5 }
 0x313   :  { %v317_v57 = vpop.permute.xlu1 %316 }
 0x314   :  { %v319_v58 = vadd.f32 %v317_v57, %v285_v46 }
 0x316   :  { %516 = vtanh.f32 %v319_v58 }
 0x317   :  { %518 = vpow2.f32 %v442_v5 }
 0x320   :  { %v517_v2 = vpop.eup %516 }
 0x321   :  { %323 = vrot.lane.b32.xlu1 %v517_v2, %s675_s3  ;;  %v519_v6 = vpop.eup %518 }
 0x322   :  { %v308_v7 = vadd.f32 1.0, %v519_v6 }
 0x324   :  { %520 = vrcp.f32 %v308_v7 }
 0x32e   :  { %v521_v8 = vpop.eup %520 }
 0x32f   :  { %v321_v9 = vsub.f32 1.0, %v521_v8  ;;  %v327_v12 = vmul.f32 %v521_v8, %v182_v35 }
 0x393   :  { %v324_v10 = vpop.permute.xlu1 %323 }
 0x394   :  { %v326_v11 = vmul.f32 %v324_v10, %v321_v9 }
 0x396   :  { %v328_v13 = vadd.f32 %v327_v12, %v326_v11 }
 0x398   :  { %415 = vrot.lane.b32.xlu1 %v328_v13, %s676_s5  ;;  %341 = vrot.lane.b32.xlu0 %v328_v13, %s675_s3 }
 0x40a   :  { %v342_v0 = vpop.permute.xlu0 %341  ;;  %v416_v18 = vpop.permute.xlu1 %415 }
 0x40b   :  { %469 = vmatmul.mubr.msk.f32.vlgmr.msra.gmra.mrb[2].mxu0 %vm184_vm2, %v342_v0 }
 0x4de   :  { %v411_v15 = vpop.f32.mrb[2].mxu0 }
 0x4df   :  { %v412_v16 = vadd.f32 %v443_v14, %v411_v15  ;;  %v470_v17 = vpop.f32.mrb[3].mxu0 }
 0x4e1   :  { %v419_v19 = vsel %vm418_vm4, %v412_v16, %v416_v18 }
 0x4e2   :  { %420 = vst [vmem:[#allocation11] sm:$0xff] %v419_v19 }
 0x4e3   :  { %643 = shalt.err (!%p640_p2)
}
 0x4e4   :  { %s644_s7 = scalar_lea.hbm %s839_s8, 128 }
 0x4e5   :  { %p645_p3 = scmp.ne.s32.totalorder %s839_s8, %s644_s7  ;;  %p648_p4 = scmp.lt.u32.totalorder %s644_s7, %s839_s8 }
 0x4e7   :  { %p650_p5 = pnand %p648_p4, %p645_p3 }
 0x4e9   :  { %653 = shalt.err (!%p650_p5)
}
 0x4ea   :  { %430 = dma.vmem_to_hbm [thread:$0]  %s428_s26, 128, %s839_s8, [#allocation4]  }
 0x4eb   :  { %660 = dma.done.wait [#allocation4], 128  }
 0x4ec   :  { %661 = vsyncadd [#allocation4], 4294967168 }
 0x4ed   :  { %434 = vsyncpa [#allocation3], 1 }
 0x4ee   :  { %435 = vsyncpa [#allocation6], 1 }
 0x4ef   :  { %436 = vsyncpa [#allocation9], 1 }
 0x4f0   :  { %437 = vsyncpa [#allocation4], 1 }

</bundles_post_ra>
